<compile_context>
chip_gen: v6e
topology: v6e:2x2x1
jax: 0.10.0
libtpu: 0.0.40
codegen_flags: <defaults>
</compile_context>

<pallas_src>
import math

import jax
import jax.numpy as jnp
from jax.experimental import pallas as pl
from jax.experimental.pallas import tpu as pltpu


# ------------------------------ tiling helpers ------------------------------ #
def _row_tile(n, cap=256):
    # Row (M / L) tiles may be padded at the array edge (stores are masked), so
    # a simple cap is safe and keeps tiles inside the default scoped VMEM.
    return n if n <= cap else cap


def _divisor_tile(n, candidates=(512, 256, 128)):
    # The softmax reduction touches every key in a tile, so S tiles must not be
    # padded -> pick a divisor of S (or fall back to a single full tile).
    for c in candidates:
        if n % c == 0:
            return c
    return n


# ----------------------- per-head projection kernel ------------------------- #
def _head_proj_kernel(x_ref, w_ref, b_ref, o_ref):
    x = x_ref[0].astype(jnp.bfloat16)            # (tn, d_model)
    w = w_ref[0]                                 # (d_model, E) bf16
    acc = jnp.dot(x, w, preferred_element_type=jnp.float32)
    o_ref[0, 0] = (acc + b_ref[0]).astype(o_ref.dtype)


def head_projection(x, w_hde, b_h1e):
    """x: (B, N, d_model) f32; w: (H, d_model, E) bf16; b: (H, 1, E) f32
       -> (B, H, N, E) bf16 written head-major (no transpose needed later)."""
    B, N, d_model = x.shape
    H, _, E = w_hde.shape
    tn = _row_tile(N)
    grid = (B, pl.cdiv(N, tn), H)
    return pl.pallas_call(
        _head_proj_kernel,
        out_shape=jax.ShapeDtypeStruct((B, H, N, E), jnp.bfloat16),
        grid_spec=pltpu.PrefetchScalarGridSpec(
            num_scalar_prefetch=0,
            grid=grid,
            in_specs=[
                # activation tile: block index constant across the inner H axis
                # -> fetched once per (batch, row tile) and reused for all heads
                pl.BlockSpec((1, tn, d_model), lambda b, i, h: (b, i, 0)),
                pl.BlockSpec((1, d_model, E), lambda b, i, h: (h, 0, 0)),
                pl.BlockSpec((1, 1, E), lambda b, i, h: (h, 0, 0)),
            ],
            out_specs=pl.BlockSpec((1, 1, tn, E), lambda b, i, h: (b, h, i, 0)),
        ),
        compiler_params=pltpu.CompilerParams(
            dimension_semantics=("parallel", "parallel", "arbitrary")),
    )(x, w_hde, b_h1e)


# --------------- fused flash attention + output projection ------------------ #
def _attn_outproj_kernel(q_ref, k_ref, v_ref, wo_ref, bo_ref, o_ref,
                         m_sc, l_sc, acc_sc, out_sc):
    h = pl.program_id(2)
    s = pl.program_id(3)
    last_h = pl.num_programs(2) - 1
    last_s = pl.num_programs(3) - 1

    @pl.when((h == 0) & (s == 0))
    def _():
        # start the per-(batch, L-tile) output accumulator at the out-proj bias
        out_sc[...] = jnp.broadcast_to(bo_ref[...], out_sc.shape)

    @pl.when(s == 0)
    def _():
        m_sc[...] = jnp.full(m_sc.shape, -jnp.inf, jnp.float32)
        l_sc[...] = jnp.zeros(l_sc.shape, jnp.float32)
        acc_sc[...] = jnp.zeros(acc_sc.shape, jnp.float32)

    q = q_ref[0, 0]                    # (tL, E) bf16 (1/sqrt(E) pre-folded)
    k = k_ref[0, 0]                    # (tS, E) bf16
    v = v_ref[0, 0]                    # (tS, D) bf16

    sc = jnp.dot(q, k.T, preferred_element_type=jnp.float32)       # (tL, tS) f32
    m_new = jnp.maximum(m_sc[...], jnp.max(sc, axis=-1, keepdims=True))
    alpha = jnp.exp(m_sc[...] - m_new)
    p = jnp.exp(sc - m_new)
    l_sc[...] = alpha * l_sc[...] + jnp.sum(p, axis=-1, keepdims=True)
    acc_sc[...] = alpha * acc_sc[...] + jnp.dot(
        p.astype(jnp.bfloat16), v, preferred_element_type=jnp.float32)
    m_sc[...] = m_new

    @pl.when(s == last_s)
    def _():
        ctx = acc_sc[...] * pl.reciprocal(l_sc[...], approx=True)   # (tL, D) f32
        out_sc[...] += jnp.dot(ctx.astype(jnp.bfloat16), wo_ref[0],
                               preferred_element_type=jnp.float32)

    @pl.when((s == last_s) & (h == last_h))
    def _():
        o_ref[0] = out_sc[...].astype(o_ref.dtype)


def attention_outproj(q_arr, k_arr, v_arr, wo_hdm, bo_1m, *,
                      n_heads, off_q=0, off_k=0, off_v=0,
                      out_dtype=jnp.float32):
    """q/k/v: head-major (B, H_total, seq, E|D) bf16 (may be the same stacked
    array with head offsets); wo: (H, D, d_model) bf16; bo: (1, d_model) f32.
    Returns (B, L, d_model)."""
    B, _, L, E = q_arr.shape
    S = k_arr.shape[2]
    D = v_arr.shape[3]
    d_model = wo_hdm.shape[2]
    tL = _row_tile(L)
    tS = _divisor_tile(S)
    grid = (B, pl.cdiv(L, tL), n_heads, S // tS)
    return pl.pallas_call(
        _attn_outproj_kernel,
        out_shape=jax.ShapeDtypeStruct((B, L, d_model), out_dtype),
        grid_spec=pltpu.PrefetchScalarGridSpec(
            num_scalar_prefetch=0,
            grid=grid,
            in_specs=[
                pl.BlockSpec((1, 1, tL, E),
                             lambda b, i, h, s: (b, off_q + h, i, 0)),
                pl.BlockSpec((1, 1, tS, E),
                             lambda b, i, h, s: (b, off_k + h, s, 0)),
                pl.BlockSpec((1, 1, tS, D),
                             lambda b, i, h, s: (b, off_v + h, s, 0)),
                pl.BlockSpec((1, D, d_model), lambda b, i, h, s: (h, 0, 0)),
                pl.BlockSpec((1, d_model), lambda b, i, h, s: (0, 0)),
            ],
            out_specs=pl.BlockSpec((1, tL, d_model),
                                   lambda b, i, h, s: (b, i, 0)),
            scratch_shapes=[
                pltpu.VMEM((tL, 1), jnp.float32),        # running max
                pltpu.VMEM((tL, 1), jnp.float32),        # running sum
                pltpu.VMEM((tL, D), jnp.float32),        # per-head context acc
                pltpu.VMEM((tL, d_model), jnp.float32),  # output accumulator
            ],
        ),
        compiler_params=pltpu.CompilerParams(
            dimension_semantics=("parallel", "parallel",
                                 "arbitrary", "arbitrary")),
    )(q_arr, k_arr, v_arr, wo_hdm, bo_1m)


# ------------- per-head context + plain linear (mix=True path) -------------- #
def _attn_ctx_kernel(q_ref, k_ref, v_ref, o_ref):
    q = q_ref[0, 0]
    k = k_ref[0, 0]
    v = v_ref[0, 0]
    sc = jnp.dot(q, k.T, preferred_element_type=jnp.float32)
    sc = sc - jnp.max(sc, axis=-1, keepdims=True)
    p = jnp.exp(sc)
    p = p * pl.reciprocal(jnp.sum(p, axis=-1, keepdims=True), approx=True)
    o_ref[0, 0] = jnp.dot(p.astype(jnp.bfloat16), v,
                          preferred_element_type=jnp.float32).astype(o_ref.dtype)


def attention_ctx(q_arr, k_arr, v_arr, *, n_heads, off_q=0, off_k=0, off_v=0):
    # TODO(synk): mix-path keeps the full (L, S) score tile in VMEM (no S tiling).
    B, _, L, E = q_arr.shape
    S = k_arr.shape[2]
    D = v_arr.shape[3]
    return pl.pallas_call(
        _attn_ctx_kernel,
        out_shape=jax.ShapeDtypeStruct((B, n_heads, L, D), jnp.bfloat16),
        grid_spec=pltpu.PrefetchScalarGridSpec(
            num_scalar_prefetch=0,
            grid=(B, n_heads),
            in_specs=[
                pl.BlockSpec((1, 1, L, E), lambda b, h: (b, off_q + h, 0, 0)),
                pl.BlockSpec((1, 1, S, E), lambda b, h: (b, off_k + h, 0, 0)),
                pl.BlockSpec((1, 1, S, D), lambda b, h: (b, off_v + h, 0, 0)),
            ],
            out_specs=pl.BlockSpec((1, 1, L, D), lambda b, h: (b, h, 0, 0)),
        ),
        compiler_params=pltpu.CompilerParams(
            dimension_semantics=("parallel", "parallel")),
    )(q_arr, k_arr, v_arr)


def _linear_kernel(x_ref, w_ref, b_ref, o_ref):
    acc = jnp.dot(x_ref[...].astype(jnp.bfloat16), w_ref[...],
                  preferred_element_type=jnp.float32)
    o_ref[...] = (acc + b_ref[...]).astype(o_ref.dtype)


def linear(x2d, w_in_out_bf16, b_1out_f32, out_dtype=jnp.float32):
    """y = x @ W + b with W already in (d_in, d_out) layout; row-tiled grid."""
    M, d_in = x2d.shape
    d_out = w_in_out_bf16.shape[1]
    tm = _row_tile(M)
    return pl.pallas_call(
        _linear_kernel,
        out_shape=jax.ShapeDtypeStruct((M, d_out), out_dtype),
        grid_spec=pltpu.PrefetchScalarGridSpec(
            num_scalar_prefetch=0,
            grid=(pl.cdiv(M, tm),),
            in_specs=[
                pl.BlockSpec((tm, d_in), lambda i: (i, 0)),
                pl.BlockSpec((d_in, d_out), lambda i: (0, 0)),
                pl.BlockSpec((1, d_out), lambda i: (0, 0)),
            ],
            out_specs=pl.BlockSpec((tm, d_out), lambda i: (i, 0)),
        ),
        compiler_params=pltpu.CompilerParams(
            dimension_semantics=("parallel",)),
    )(x2d, w_in_out_bf16, b_1out_f32)


# -------------------------------- module glue ------------------------------- #
class AttentionLayerPallas:
    """Pallas port of AttentionLayer(FullAttention(mask_flag=False), ...)."""

    def __init__(self, d_model, n_heads, d_keys=None, d_values=None, mix=False,
                 key=jax.random.PRNGKey(42)):
        d_keys = d_keys or d_model // n_heads
        d_values = d_values or d_model // n_heads
        self.d_model = d_model
        self.n_heads = n_heads
        self.d_keys = d_keys
        self.d_values = d_values
        self.mix = mix

        def init_linear(k, d_out, d_in):
            kw, kb = jax.random.split(k)
            bound = 1.0 / math.sqrt(d_in)
            w = jax.random.uniform(kw, (d_out, d_in), jnp.float32, -bound, bound)
            b = jax.random.uniform(kb, (d_out,), jnp.float32, -bound, bound)
            return w, b

        kq, kk, kv, ko = jax.random.split(key, 4)
        H, E, D = n_heads, d_keys, d_values
        # master weights (torch nn.Linear layout), f32 — used by the reference
        self.wq, self.bq = init_linear(kq, H * E, d_model)
        self.wk, self.bk = init_linear(kk, H * E, d_model)
        self.wv, self.bv = init_linear(kv, H * D, d_model)
        self.wo, self.bo = init_linear(ko, d_model, H * D)

        # kernel-layout parameters (computed once, never per-forward)
        scale = 1.0 / math.sqrt(E)          # folded into the query projection

        def to_heads(w, b, e, scl=1.0):
            w_h = jnp.transpose(w.reshape(H, e, d_model), (0, 2, 1)) * scl
            b_h = b.reshape(H, 1, e).astype(jnp.float32) * scl
            return w_h.astype(jnp.bfloat16), b_h

        self._wq_k, self._bq_k = to_heads(self.wq, self.bq, E, scale)
        self._wk_k, self._bk_k = to_heads(self.wk, self.bk, E)
        self._wv_k, self._bv_k = to_heads(self.wv, self.bv, D)
        # output projection, per-head slices of W_out^T: (H, D, d_model)
        self._wo_k = jnp.transpose(self.wo).reshape(H, D, d_model).astype(jnp.bfloat16)
        self._bo_k = self.bo.reshape(1, d_model).astype(jnp.float32)
        # flat W_out^T for the (rare) mix=True path
        self._wo_lin = jnp.transpose(self.wo).astype(jnp.bfloat16)
        # stacked QKV weights for the fused self-attention projection
        if E == D:
            self._wqkv_k = jnp.concatenate([self._wq_k, self._wk_k, self._wv_k], axis=0)
            self._bqkv_k = jnp.concatenate([self._bq_k, self._bk_k, self._bv_k], axis=0)
        else:
            self._wqkv_k = None
            self._bqkv_k = None

    def __call__(self, queries, keys, values, attn_mask=None):
        # TODO(synk): attn_mask (TriangularCausalMask) is not applied; matches
        # FullAttention(mask_flag=False) as used by the Informer encoder.
        B, L, _ = queries.shape
        H, D = self.n_heads, self.d_values

        if (queries is keys) and (keys is values) and self._wqkv_k is not None:
            # self-attention fast path: one fused QKV projection, input read once
            qkv = head_projection(queries, self._wqkv_k, self._bqkv_k)   # (B,3H,L,E)
            q_arr = k_arr = v_arr = qkv
            off_q, off_k, off_v = 0, H, 2 * H
        else:
            q_arr = head_projection(queries, self._wq_k, self._bq_k)     # (B,H,L,E)
            k_arr = head_projection(keys, self._wk_k, self._bk_k)        # (B,H,S,E)
            v_arr = head_projection(values, self._wv_k, self._bv_k)      # (B,H,S,D)
            off_q = off_k = off_v = 0

        if not self.mix:
            out = attention_outproj(q_arr, k_arr, v_arr, self._wo_k, self._bo_k,
                                    n_heads=H, off_q=off_q, off_k=off_k,
                                    off_v=off_v, out_dtype=queries.dtype)
            return out, None

        # mix=True: torch's out.transpose(2,1).contiguous().view(B, L, -1).
        # ctx is already head-major (B,H,L,D), so that view == a plain reshape.
        ctx = attention_ctx(q_arr, k_arr, v_arr, n_heads=H,
                            off_q=off_q, off_k=off_k, off_v=off_v)        # (B,H,L,D)
        out = linear(ctx.reshape(B * L, H * D), self._wo_lin, self._bo_k,
                     out_dtype=queries.dtype)
        return out.reshape(B, L, self.d_model), None


# --------------------------------- reference -------------------------------- #
def _reference(layer, queries, keys, values):
    B, L, _ = queries.shape
    S = keys.shape[1]
    H, E, D = layer.n_heads, layer.d_keys, layer.d_values
    q = (queries @ layer.wq.T + layer.bq).reshape(B, L, H, E)
    k = (keys @ layer.wk.T + layer.bk).reshape(B, S, H, E)
    v = (values @ layer.wv.T + layer.bv).reshape(B, S, H, D)
    scores = jnp.einsum("blhe,bshe->bhls", q, k) / math.sqrt(E)
    a = jax.nn.softmax(scores, axis=-1)
    out = jnp.einsum("bhls,bshd->blhd", a, v)        # (B, L, H, D)
    if layer.mix:
        out = jnp.transpose(out, (0, 2, 1, 3))       # torch .transpose(2, 1)
    out = out.reshape(B, L, H * D)
    return out @ layer.wo.T + layer.bo


if __name__ == "__main__":
    B, L, S, d_model, n_heads = 2, 8, 8, 32, 4
    kq, kk, kv = jax.random.split(jax.random.PRNGKey(0), 3)
    queries = jax.random.normal(kq, (B, L, d_model), jnp.float32)
    keys = jax.random.normal(kk, (B, S, d_model), jnp.float32)
    values = jax.random.normal(kv, (B, S, d_model), jnp.float32)

    tol = dict(rtol=2e-2, atol=2e-2)   # bf16 MXU inputs with f32 accumulation

    # 1) cross-attention (distinct q/k/v), mix=False (default Informer usage)
    layer = AttentionLayerPallas(d_model, n_heads, mix=False)
    out, attn = layer(queries, keys, values, attn_mask=None)
    out = jax.block_until_ready(out)
    assert out.shape == (B, L, d_model) and attn is None
    assert jnp.allclose(out, _reference(layer, queries, keys, values), **tol), \
        "cross-attention mismatch vs reference"

    # 2) self-attention (fused stacked-QKV projection path)
    out_sa, _ = layer(queries, queries, queries, attn_mask=None)
    out_sa = jax.block_until_ready(out_sa)
    assert jnp.allclose(out_sa, _reference(layer, queries, queries, queries), **tol), \
        "self-attention mismatch vs reference"

    # 3) mix=True path (torch's transpose(2,1).view(B, L, -1))
    layer_mix = AttentionLayerPallas(d_model, n_heads, mix=True)
    out_mx, _ = layer_mix(queries, keys, values, attn_mask=None)
    out_mx = jax.block_until_ready(out_mx)
    assert jnp.allclose(out_mx, _reference(layer_mix, queries, keys, values), **tol), \
        "mix=True mismatch vs reference"

    # 4) larger shapes exercising L-tile padding (L=300 -> 256 + padded edge
    #    tile) and multi-tile S streaming in the flash kernel.
    B2, L2, S2, dm2, H2 = 1, 300, 256, 64, 4
    k1, k2, k3 = jax.random.split(jax.random.PRNGKey(1), 3)
    q2 = jax.random.normal(k1, (B2, L2, dm2), jnp.float32)
    kk2 = jax.random.normal(k2, (B2, S2, dm2), jnp.float32)
    vv2 = jax.random.normal(k3, (B2, S2, dm2), jnp.float32)
    layer2 = AttentionLayerPallas(dm2, H2, mix=False, key=jax.random.PRNGKey(7))
    out2, _ = layer2(q2, kk2, vv2, attn_mask=None)
    out2 = jax.block_until_ready(out2)
    assert out2.shape == (B2, L2, dm2)
    assert jnp.allclose(out2, _reference(layer2, q2, kk2, vv2),
                        rtol=3e-2, atol=3e-2), "tiled-L mismatch vs reference"

    print("KERNEL_OK")
</pallas_src>

<mosaic_0001>
module attributes {stable_mosaic.version = 11 : i64} {
  func.func @_head_proj_kernel(%arg0: i32, %arg1: i32, %arg2: i32, %arg3: memref<1x8x32xf32, #tpu.memory_space<vmem>>, %arg4: memref<1x32x8xbf16, #tpu.memory_space<vmem>>, %arg5: memref<1x1x8xf32, #tpu.memory_space<vmem>>, %arg6: memref<1x1x8x8xbf16, #tpu.memory_space<vmem>>) attributes {dimension_semantics = [#tpu.dimension_semantics<parallel>, #tpu.dimension_semantics<parallel>, #tpu.dimension_semantics<arbitrary>], iteration_bounds = array<i64: 2, 1, 4>, scalar_prefetch = 0 : i64, scratch_operands = 0 : i64, tpu.core_type = #tpu.core_type<tc>, window_params = [{transform_indices = @transform_0, window_bounds = array<i64: 1, 8, 32>}, {transform_indices = @transform_1, window_bounds = array<i64: 1, 32, 8>}, {transform_indices = @transform_2, window_bounds = array<i64: 1, 1, 8>}, {transform_indices = @transform_3, window_bounds = array<i64: 1, 1, 8, 8>}]} {
    %c0 = arith.constant 0 : index
    %c0_0 = arith.constant 0 : index
    %c0_1 = arith.constant 0 : index
    %0 = vector.load %arg3[%c0, %c0_0, %c0_1] : memref<1x8x32xf32, #tpu.memory_space<vmem>>, vector<1x8x32xf32>
    %1 = vector.shape_cast %0 : vector<1x8x32xf32> to vector<8x32xf32>
    %2 = arith.truncf %1 : vector<8x32xf32> to vector<8x32xbf16>
    %c0_2 = arith.constant 0 : index
    %c0_3 = arith.constant 0 : index
    %c0_4 = arith.constant 0 : index
    %3 = vector.load %arg4[%c0_2, %c0_3, %c0_4] : memref<1x32x8xbf16, #tpu.memory_space<vmem>>, vector<1x32x8xbf16>
    %4 = vector.shape_cast %3 : vector<1x32x8xbf16> to vector<32x8xbf16>
    %cst = arith.constant dense<0.000000e+00> : vector<8x8xf32>
    %5 = tpu.matmul %2, %4, %cst {dimension_numbers = #tpu.dot_dimension_numbers<[1], [0], [0], [1], [0, 0, 1, 1], [], []>} : vector<8x32xbf16>, vector<32x8xbf16>, vector<8x8xf32> -> vector<8x8xf32>
    %c0_5 = arith.constant 0 : index
    %c0_6 = arith.constant 0 : index
    %c0_7 = arith.constant 0 : index
    %6 = vector.load %arg5[%c0_5, %c0_6, %c0_7] : memref<1x1x8xf32, #tpu.memory_space<vmem>>, vector<1x1x8xf32>
    %7 = vector.shape_cast %6 : vector<1x1x8xf32> to vector<1x8xf32>
    %8 = vector.broadcast %7 : vector<1x8xf32> to vector<8x8xf32>
    %9 = arith.addf %5, %8 : vector<8x8xf32>
    %10 = arith.truncf %9 : vector<8x8xf32> to vector<8x8xbf16>
    %c0_8 = arith.constant 0 : index
    %c0_9 = arith.constant 0 : index
    %c0_10 = arith.constant 0 : index
    %c0_11 = arith.constant 0 : index
    %11 = vector.load %arg6[%c0_8, %c0_9, %c0_10, %c0_11] : memref<1x1x8x8xbf16, #tpu.memory_space<vmem>>, vector<1x1x8x8xbf16>
    %12 = vector.shape_cast %11 : vector<1x1x8x8xbf16> to vector<8x8xbf16>
    %13 = vector.shape_cast %10 : vector<8x8xbf16> to vector<1x1x8x8xbf16>
    tpu.vector_store %arg6[%c0_8, %c0_9, %c0_10, %c0_11], %13 {strides = array<i32>} : memref<1x1x8x8xbf16, #tpu.memory_space<vmem>>, vector<1x1x8x8xbf16>,
    return
  }
  func.func @transform_0(%arg0: i32, %arg1: i32, %arg2: i32) -> (i32, i32, i32) {
    %c0_i32 = arith.constant 0 : i32
    %c0_i32_0 = arith.constant 0 : i32
    return %arg0, %arg1, %c0_i32 : i32, i32, i32
  }
  func.func @transform_1(%arg0: i32, %arg1: i32, %arg2: i32) -> (i32, i32, i32) {
    %c0_i32 = arith.constant 0 : i32
    %c0_i32_0 = arith.constant 0 : i32
    %c0_i32_1 = arith.constant 0 : i32
    return %arg2, %c0_i32, %c0_i32_0 : i32, i32, i32
  }
  func.func @transform_2(%arg0: i32, %arg1: i32, %arg2: i32) -> (i32, i32, i32) {
    %c0_i32 = arith.constant 0 : i32
    %c0_i32_0 = arith.constant 0 : i32
    %c0_i32_1 = arith.constant 0 : i32
    return %arg2, %c0_i32, %c0_i32_0 : i32, i32, i32
  }
  func.func @transform_3(%arg0: i32, %arg1: i32, %arg2: i32) -> (i32, i32, i32, i32) {
    %c0_i32 = arith.constant 0 : i32
    %c0_i32_0 = arith.constant 0 : i32
    return %arg0, %arg2, %arg1, %c0_i32 : i32, i32, i32, i32
  }
}

</mosaic_0001>

<bundles_post_ra>
// kernel: tpu_custom_call.1
= control target key start
LH: loop header
LB: loop body
LE: loop exit
PB: predicated region body
PF: predicated region fallthrough
CT: control target
= control target key end

     0   :  { %8 = vsyncpa [#allocation3], 0  ;;  %s788_s0 = inlined_call_operand.vmem [shape: f32[2,8,32], index: 0, kind: input, shape index: {}]   ;;  %s789_s1 = inlined_call_operand.vmem [shape: bf16[4,32,8], index: 1, kind: input, shape index: {}]   ;;  %s790_s2 = inlined_call_operand.vmem [shape: f32[4,1,8], index: 2, kind: input, shape index: {}]   ;;  %s791_s3 = inlined_call_operand.hbm [shape: bf16[2,4,8,8], index: 3, kind: output, shape index: {}]  }
   0x1   :  { %10 = vsyncpa [#allocation3 + $0x1], 0  ;;  %s646_s12 = smov 0   ;;  %s648_s13 = smov 0  }
   0x2   :  { %s650_s14 = smov 0   ;;  %s652_s15 = smov 0  }
   0x3   :  { %s654_s16 = smov 0   ;;  %s656_s17 = smov 0  }
   0x4   :  { %s658_s18 = smov 0   ;;  %s660_s19 = smov 0  }
   0x5 LB: > { %s424_s20 = sadd.s32 4294967295, %s621_s19   ;;  %s425_s21 = sadd.s32 4294967294, %s621_s19   ;;  %s621_s19 = sphi %s660_s19, %s16_s19   ;;  %s617_s18 = sphi %s658_s18, %s800_s18   ;;  %s613_s17 = sphi %s656_s17, %s799_s17   ;;  %s609_s16 = sphi %s654_s16, %s798_s16   ;;  %s605_s15 = sphi %s652_s15, %s797_s15   ;;  %s601_s14 = sphi %s650_s14, %s796_s14   ;;  %s597_s13 = sphi %s648_s13, %s795_s13   ;;  %s593_s12 = sphi %s646_s12, %s794_s12  }
   0x6   : > { %s28_s22 = sadd.s32 1, %s613_s17  ;;  %s35_s23 = sadd.s32 1, %s617_s18 }
   0x7   : > { %p29_p0 = scmp.ge.s32.totalorder %s28_s22, 4  ;;  %p136_p1 = scmp.ne.s32.totalorder %s601_s14, %s597_s13 }
   0x8   : > { %p137_p2 = scmp.eq.s32.totalorder %s424_s20, 7  ;;  %p142_p5 = scmp.ne.s32.totalorder %s597_s13, %s593_s12 }
   0x9   : > { %s802_s22 = smov (%p29_p0, %s28_s22), 0  ;;  %s804_s23 = smov (!%p29_p0, %s35_s23), %s617_s18 }
   0xa   : > { %s120_s24 = ssub.s32 %s613_s17, %s802_s22  ;;  %p697_p3 = por %p137_p2, %p136_p1 }
   0xb   : > { %p37_p4 = scmp.ge.s32.totalorder %s804_s23, 2  ;;  %p143_p6 = scmp.eq.s32.totalorder %s425_s21, 7 }
   0xc   : > { %p428_p7 = scmp.ge.s32.totalorder %s621_s19, 1  ;;  %p185_p9 = scmp.lt.s32.totalorder %s621_s19, 9 }
   0xd   : > { %s806_s23 = smov (%p37_p4, %s804_s23), 0  ;;  %p706_p8 = por %p143_p6, %p142_p5 }
   0xe   : > { %s119_s27 = ssub.s32 %s617_s18, %s806_s23  ;;  %s126_s28 = sadd.s32 1, %s601_s14 }
   0xf   : > { %s121_s29 = sor.u32 %s120_s24, %s119_s27  ;;  %p186_p10 = pnand %p428_p7, %p185_p9 }
  0x10   : > { %p124_p11 = scmp.eq.s32.totalorder %s121_s29, 0  ;;  %p226_p12 = scmp.lt.s32.totalorder (!%p186_p10), %s605_s15, 3 }
  0x11   : > { %189 = sbr.rel (%p186_p10) target bundleno = 245 (0xf5), region = 32  ;;  %p219_p13 = scmp.lt.s32.totalorder (!%p186_p10), %s609_s16, 1 }
  0x12   : > { %s715_s30 = scalar_select %p124_p11, %s601_s14, %s126_s28  }
  0x13   : > { %s216_s24 = sand.u32 (!%p186_p10), 1, %s597_s13   ;;  %s438_s28 = sshll.u32 (!%p186_p10), %s609_s16, 2 }
  0x14   : > { %s429_s27 = sshll.u32 (!%p186_p10), %s216_s24, 2  ;;  %s320_s7 = sadd.s32 (!%p186_p10), %s605_s15, %s438_s28 }
  0x15   : > { %s439_s8 = sshll.u32 (!%p186_p10), %s320_s7, 6 }
  0x16   : > { %v623_v0 = vmov 0.0   ;;  %vm624_vm0 = vmmov 0   ;;  %s227_s4 = scalar_select %p226_p12, %s605_s15, 3  ;;  %vm260_vm1 = vcmask 261120   ;;  %vm305_vm2 = vcmask 60416  }
  0x17   : > { %446 = vmatprep.subr.bf16.mxu0 %v623_v0  ;;  %450 = vmatprep.mubr.msk.bf16.mxu0 %vm624_vm0, %v623_v0  ;;  %s220_s5 = scalar_select %p219_p13, %s609_s16, 1 }
  0x18   : > { %s442_s6 = sshll.u32 %s227_s4, 4  ;;  %s308_s15 = scalar_lea.sflag [#allocation3], %s216_s24 }
  0x19   : > { %s230_s9 = scalar_lea.vmem %s789_s1, %s442_s6  ;;  %s430_s10 = sshll.u32 %s220_s5, 3 }
  0x1a   : > { %v527_v1 = vld [vmem:[%s230_s9 + $0x8] sm:$0xff]   ;;  %s225_s21 = scalar_lea.vmem %s788_s0, %s430_s10  ;;  %v528_v2 = vld [vmem:[%s230_s9] sm:$0xff]   ;;  %s233_s5 = scalar_lea.vmem %s790_s2, %s227_s4 }
  0x1b   : > { %447 = vmatpush3.bf16.msra.mxu0 %v527_v1  ;;  %v235_v3 = vld [vmem:[%s225_s21] sm:$0xff]  ;;  %s218_s10 = scalar_lea.vmem [#allocation2], %s429_s27  ;;  %s736_s21 = scalar_lea.hbm %s791_s3, %s439_s8 }
  0x1c   : > { %448 = vmatprep.subr.bf16.mxu0 %v623_v0  ;;  %v236_v4 = vpack.c.bf16 %v235_v3, %v235_v3  ;;  %v433_v5 = vld [vmem:[%s233_s5] ss:$0 sm:$0xff]  ;;  %s324_s9 = sshll.u32 %s218_s10, 4  ;;  %s625_s4 = smov [#allocation2]   ;;  %s738_s9 = int_to_ptr.vmem [resolvable:$true] %s324_s9 }
  0x1d   : > { %s529_s16 = scalar_lea.vmem %s738_s9, 64  ;;  %s533_s27 = sshll.u32 %s625_s4, 4  ;;  %s534_s27 = int_to_ptr.vmem [resolvable:$false] %s533_s27 }
  0x1e   : > { %p530_p0 = scmp.ne.s32.totalorder %s738_s9, %s529_s16  ;;  %s535_s28 = scalar_lea.vmem %s534_s27, 128 }
  0x1f   : > { %449 = vmatpush3.bf16.msra.mxu0 %v528_v2  ;;  %p536_p4 = scmp.lt.s32.totalorder %s738_s9, %s534_s27  ;;  %p537_p5 = scmp.lt.s32.totalorder %s535_s28, %s529_s16 }
  0x20   : > { %p531_p1 = pnand %p530_p0, %p697_p3 }
  0x21   : > { %p538_p6 = por %p537_p5, %p536_p4 }
  0x22   : > { %451 = vmatmul.mubr.msk.bf16.vlgmr.msra.gmra.mxu0 %vm260_vm1, %v236_v4  ;;  %p532_p2 = pneg %p531_p1 }
  0x24   : > { %p539_p7 = pnand %p538_p6, %p532_p2 }
  0xe2   : > { %v298_v6 = vpop.f32.mrf.mxu0 }
  0xe3   : > { %v299_v7 = vadd.f32 %v433_v5, %v298_v6 }
  0xe4   : > { %v452_v8 = vpop.f32.mrf.mxu0 }
  0xe5   : > { %v304_v9 = vpack.c.bf16 %v299_v7, %v299_v7 }
  0xe6   : > { %v301_v10 = vpop.f32.mrf.mxu0 }
  0xe7   : > { %306 = vst.msk [vmem:[%s218_s10] sm:$0xf] %vm305_vm2, %v304_v9 }
  0xe8   : > { %v453_v11 = vpop.f32.mrf.mxu0 }
  0xe9   : > { %542 = shalt.err (!%p539_p7)
}
  0xea   : > { %s543_s29 = scalar_lea.hbm %s736_s21, 64  ;;  %s547_s5 = scalar_lea.hbm %s791_s3, 512 }
  0xeb   : > { %p544_p9 = scmp.ne.s32.totalorder %s736_s21, %s543_s29  ;;  %p548_p12 = scmp.lt.s32.totalorder %s736_s21, %s791_s3 }
  0xec   : > { %p549_p13 = scmp.lt.s32.totalorder %s547_s5, %s543_s29 }
  0xed   : > { %p545_p10 = pnand %p544_p9, %p697_p3 }
  0xee   : > { %p550_p0 = por %p549_p13, %p548_p12 }
  0xef   : > { %p546_p11 = pneg %p545_p10 }
  0xf1   : > { %p551_p1 = pnand %p550_p0, %p546_p11 }
  0xf3   : > { %554 = shalt.err (!%p551_p1)
}
  0xf4   : > { %454 = dma.vmem_to_hbm [thread:$0]  (%p697_p3), %s738_s9, 64, %s736_s21, %s308_s15  }
  0xf5 PF: > { %p460_p2 = scmp.ge.s32.totalorder %s621_s19, 2  ;;  %s336_s10 = sand.u32 1, %s593_s12  }
  0xf6   : > { %s337_s11 = scalar_lea.sflag [#allocation3], %s336_s10 }
  0xf7   : > { %p457_p4 = pnand %p460_p2, %p706_p8 }
  0xf9   : > { %p458_p5 = pneg %p457_p4 }
  0xfb   : > { %588 = dma.done.wait (%p458_p5), %s337_s11, 64  }
  0xfc   : > { %590 = vsyncadd (%p458_p5), %s337_s11, 4294967232  ;;  %s16_s19 = sadd.s32 1, %s621_s19   ;;  %s794_s12 = smov %s597_s13 }
  0xfd   : > { %p13_p6 = scmp.ge.s32.totalorder %s16_s19, 10   ;;  %s795_s13 = smov %s601_s14 }
  0xfe   : > { %s796_s14 = smov %s715_s30  ;;  %s797_s15 = smov %s613_s17 }
  0xff   : > { %s798_s16 = smov %s617_s18  ;;  %s799_s17 = smov %s802_s22 }
 0x100   : > { %s800_s18 = smov %s806_s23  ;;  %15 = sbr.rel (!%p13_p6) target bundleno = 5 (0x5), region = 73 }
 0x105   :  { %342 = vsyncpa [#allocation3], 1 }
 0x106   :  { %344 = vsyncpa [#allocation3 + $0x1], 1 }

</bundles_post_ra>
